<compile_context>
chip_gen: v7x
topology: tpu7x:2x2x1
jax: 0.10.0
libtpu: 0.0.40
codegen_flags: <defaults>
</compile_context>

<pallas_src>
import math
import functools

import jax
import jax.numpy as jnp
from jax.experimental import pallas as pl
from jax.experimental.pallas import tpu as pltpu


def _attention_kernel(p_ref, wq_ref, bq_ref, wkv_ref, bkv_ref, out_ref, *,
                      scale, compute_dtype):
    tb, n, c = p_ref.shape
    p = p_ref[...]                                         # (TB, n, C) f32

    # Fused K|V projection over all TB*n rows: one MXU pass, N = 2C lanes.
    p_mat = p.reshape(tb * n, c).astype(compute_dtype)
    kv = jnp.dot(p_mat, wkv_ref[...].astype(compute_dtype),
                 preferred_element_type=jnp.float32) + bkv_ref[...]   # (TB*n, 2C)
    kv = kv.reshape(tb, n, 2 * c)
    k = kv[:, :, :c]                                       # (TB, n, C) f32
    v = kv[:, :, c:]                                       # (TB, n, C) f32

    # Only row 0 of each batch element is consumed downstream -> project Q for
    # those TB rows only (saves a factor of n on Q/scores/softmax/AV).
    p0 = p[:, 0, :].astype(compute_dtype)                  # (TB, C)
    q0 = jnp.dot(p0, wq_ref[...].astype(compute_dtype),
                 preferred_element_type=jnp.float32) + bq_ref[...]    # (TB, C)

    # Scaled scores of row 0 against all n keys, per batch element: (TB, n).
    # Broadcast-multiply + lane reduce avoids materializing k.T.
    scores = jnp.sum(q0[:, None, :] * k, axis=-1) * scale

    # Row-wise softmax in f32; the divide goes to the EUP via approx reciprocal.
    m = jnp.max(scores, axis=-1, keepdims=True)
    e = jnp.exp(scores - m)
    denom = jnp.sum(e, axis=-1, keepdims=True)
    adj = e * pl.reciprocal(denom, approx=True)            # (TB, n)

    # Attention-weighted sum of values: (TB, C).
    out = jnp.sum(adj[:, :, None] * v, axis=1)
    out_ref[...] = out.astype(out_ref.dtype)


def attention_forward(P, wq, bq, wk, bk, wv, bv, *,
                      compute_dtype=jnp.bfloat16, block_b=None):
    """P: (B, n, C). Weights w*: (C, C) laid out as (in, out). Biases: (C,)."""
    B, n, C = P.shape
    scale = 1.0 / math.sqrt(C)

    # Fuse K|V weights: one (C, 2C) matmul instead of two (C, C) passes.
    wkv = jnp.concatenate([wk, wv], axis=1)                 # (C, 2C)
    bkv = jnp.concatenate([bk, bv], axis=0).reshape(1, 2 * C)
    bq2 = bq.reshape(1, C)

    # Batch-block size: aim for >= ~256 rows (TB*n) per grid step.  TB is either
    # the whole (padded) batch or a multiple of 8 so output stores fill sublanes.
    if block_b is None:
        target = max(1, 256 // max(n, 1))
        tb = B if B <= target else max(8, (target // 8) * 8)
    else:
        tb = block_b
    b_pad = ((B + tb - 1) // tb) * tb
    if b_pad != B:
        P = jnp.pad(P, ((0, b_pad - B), (0, 0), (0, 0)))
    grid = (b_pad // tb,)

    kernel = functools.partial(_attention_kernel, scale=scale,
                               compute_dtype=compute_dtype)

    out = pl.pallas_call(
        kernel,
        out_shape=jax.ShapeDtypeStruct((b_pad, C), P.dtype),
        grid_spec=pltpu.PrefetchScalarGridSpec(
            num_scalar_prefetch=0,
            grid=grid,
            in_specs=[
                pl.BlockSpec((tb, n, C), lambda b: (b, 0, 0)),   # P block
                pl.BlockSpec((C, C), lambda b: (0, 0)),          # Wq
                pl.BlockSpec((1, C), lambda b: (0, 0)),          # bq
                pl.BlockSpec((C, 2 * C), lambda b: (0, 0)),      # Wk|Wv fused
                pl.BlockSpec((1, 2 * C), lambda b: (0, 0)),      # bk|bv fused
            ],
            out_specs=pl.BlockSpec((tb, C), lambda b: (b, 0)),
        ),
        compiler_params=pltpu.CompilerParams(
            dimension_semantics=("parallel",)),
    )(P, wq, bq2, wkv, bkv)

    return out[:B]                                           # (B, C)


def _reference_forward(P, wq, bq, wk, bk, wv, bv):
    """Pure-JAX reference mirroring the PyTorch module (f32)."""
    C = P.shape[-1]
    Q = P @ wq + bq
    K = P @ wk + bk
    V = P @ wv + bv
    Adj = jnp.einsum("bnc,bmc->bnm", Q, K) / math.sqrt(C)
    Adj = jax.nn.softmax(Adj, axis=2)
    gcn = jnp.einsum("bnm,bmc->bnc", Adj, V)
    return gcn[:, 0, :]


if __name__ == "__main__":
    B, n, C = 2, 8, 32
    key = jax.random.PRNGKey(0)
    k_p, k_wq, k_bq, k_wk, k_bk, k_wv, k_bv = jax.random.split(key, 7)

    # Deterministic parameter init (uniform in +/- 1/sqrt(C), like nn.Linear default)
    bound = 1.0 / math.sqrt(C)
    P = jax.random.normal(k_p, (B, n, C), dtype=jnp.float32)
    wq = jax.random.uniform(k_wq, (C, C), jnp.float32, -bound, bound)
    bq = jax.random.uniform(k_bq, (C,), jnp.float32, -bound, bound)
    wk = jax.random.uniform(k_wk, (C, C), jnp.float32, -bound, bound)
    bk = jax.random.uniform(k_bk, (C,), jnp.float32, -bound, bound)
    wv = jax.random.uniform(k_wv, (C, C), jnp.float32, -bound, bound)
    bv = jax.random.uniform(k_bv, (C,), jnp.float32, -bound, bound)

    # f32 compute path: tight check against the pure-JAX reference
    # (small slack for the EUP approx reciprocal in the softmax).
    out_f32 = jax.block_until_ready(
        attention_forward(P, wq, bq, wk, bk, wv, bv, compute_dtype=jnp.float32))
    ref = _reference_forward(P, wq, bq, wk, bk, wv, bv)
    assert out_f32.shape == (B, C)
    assert jnp.allclose(out_f32, ref, atol=1e-2, rtol=1e-2)

    # Default bf16-matmul path (v6e/v7x MXU friendly): compare against a
    # reference fed with bf16-rounded matmul inputs.
    out_bf16 = jax.block_until_ready(attention_forward(P, wq, bq, wk, bk, wv, bv))
    cast = lambda x: x.astype(jnp.bfloat16).astype(jnp.float32)
    ref_bf16 = _reference_forward(cast(P), cast(wq), bq, cast(wk), bk, cast(wv), bv)
    assert out_bf16.shape == (B, C)
    assert jnp.allclose(out_bf16, ref_bf16, atol=1e-2, rtol=1e-2)

    print("KERNEL_OK")
</pallas_src>

<mosaic_0001>
module attributes {stable_mosaic.version = 11 : i64} {
  func.func @_attention_kernel(%arg0: i32, %arg1: memref<2x8x32xf32, #tpu.memory_space<vmem>>, %arg2: memref<32x32xf32, #tpu.memory_space<vmem>>, %arg3: memref<1x32xf32, #tpu.memory_space<vmem>>, %arg4: memref<32x64xf32, #tpu.memory_space<vmem>>, %arg5: memref<1x64xf32, #tpu.memory_space<vmem>>, %arg6: memref<2x32xf32, #tpu.memory_space<vmem>>) attributes {dimension_semantics = [#tpu.dimension_semantics<parallel>], iteration_bounds = array<i64: 1>, scalar_prefetch = 0 : i64, scratch_operands = 0 : i64, tpu.core_type = #tpu.core_type<tc>, window_params = [{transform_indices = @transform_0, window_bounds = array<i64: 2, 8, 32>}, {pipeline_mode = #tpu.pipeline_mode<synchronous>, transform_indices = @transform_1, window_bounds = array<i64: 32, 32>}, {pipeline_mode = #tpu.pipeline_mode<synchronous>, transform_indices = @transform_2, window_bounds = array<i64: 1, 32>}, {pipeline_mode = #tpu.pipeline_mode<synchronous>, transform_indices = @transform_3, window_bounds = array<i64: 32, 64>}, {pipeline_mode = #tpu.pipeline_mode<synchronous>, transform_indices = @transform_4, window_bounds = array<i64: 1, 64>}, {transform_indices = @transform_5, window_bounds = array<i64: 2, 32>}]} {
    %c0 = arith.constant 0 : index
    %c0_0 = arith.constant 0 : index
    %c0_1 = arith.constant 0 : index
    %0 = vector.load %arg1[%c0, %c0_0, %c0_1] : memref<2x8x32xf32, #tpu.memory_space<vmem>>, vector<2x8x32xf32>
    %1 = vector.shape_cast %0 : vector<2x8x32xf32> to vector<16x32xf32>
    %c0_2 = arith.constant 0 : index
    %c0_3 = arith.constant 0 : index
    %2 = vector.load %arg4[%c0_2, %c0_3] : memref<32x64xf32, #tpu.memory_space<vmem>>, vector<32x64xf32>
    %cst = arith.constant dense<0.000000e+00> : vector<16x64xf32>
    %3 = tpu.matmul %1, %2, %cst {dimension_numbers = #tpu.dot_dimension_numbers<[1], [0], [0], [1], [0, 0, 1, 1], [], []>} : vector<16x32xf32>, vector<32x64xf32>, vector<16x64xf32> -> vector<16x64xf32>
    %c0_4 = arith.constant 0 : index
    %c0_5 = arith.constant 0 : index
    %4 = vector.load %arg5[%c0_4, %c0_5] : memref<1x64xf32, #tpu.memory_space<vmem>>, vector<1x64xf32>
    %5 = vector.broadcast %4 : vector<1x64xf32> to vector<16x64xf32>
    %6 = arith.addf %3, %5 : vector<16x64xf32>
    %7 = vector.shape_cast %6 : vector<16x64xf32> to vector<2x8x64xf32>
    %8 = vector.extract_strided_slice %7 {offsets = [0, 0, 0], sizes = [2, 8, 32], strides = [1, 1, 1]} : vector<2x8x64xf32> to vector<2x8x32xf32>
    %9 = vector.extract_strided_slice %7 {offsets = [0, 0, 32], sizes = [2, 8, 32], strides = [1, 1, 1]} : vector<2x8x64xf32> to vector<2x8x32xf32>
    %10 = vector.extract_strided_slice %0 {offsets = [0, 0, 0], sizes = [2, 1, 32], strides = [1, 1, 1]} : vector<2x8x32xf32> to vector<2x1x32xf32>
    %11 = vector.shape_cast %10 : vector<2x1x32xf32> to vector<2x32xf32>
    %c0_6 = arith.constant 0 : index
    %c0_7 = arith.constant 0 : index
    %12 = vector.load %arg2[%c0_6, %c0_7] : memref<32x32xf32, #tpu.memory_space<vmem>>, vector<32x32xf32>
    %cst_8 = arith.constant dense<0.000000e+00> : vector<2x32xf32>
    %13 = tpu.matmul %11, %12, %cst_8 {dimension_numbers = #tpu.dot_dimension_numbers<[1], [0], [0], [1], [0, 0, 1, 1], [], []>} : vector<2x32xf32>, vector<32x32xf32>, vector<2x32xf32> -> vector<2x32xf32>
    %c0_9 = arith.constant 0 : index
    %c0_10 = arith.constant 0 : index
    %14 = vector.load %arg3[%c0_9, %c0_10] : memref<1x32xf32, #tpu.memory_space<vmem>>, vector<1x32xf32>
    %15 = vector.broadcast %14 : vector<1x32xf32> to vector<2x32xf32>
    %16 = arith.addf %13, %15 : vector<2x32xf32>
    %17 = vector.shape_cast %16 : vector<2x32xf32> to vector<2x1x32xf32>
    %18 = vector.broadcast %17 : vector<2x1x32xf32> to vector<2x8x32xf32>
    %19 = arith.mulf %18, %8 : vector<2x8x32xf32>
    %cst_11 = arith.constant dense<0.000000e+00> : vector<2x8xf32>
    %20 = vector.multi_reduction <add>, %19, %cst_11 [2] : vector<2x8x32xf32> to vector<2x8xf32>
    %cst_12 = arith.constant 0.176776692 : f32
    %21 = vector.broadcast %cst_12 : f32 to vector<2x8xf32>
    %22 = arith.mulf %20, %21 : vector<2x8xf32>
    %cst_13 = arith.constant dense<0xFF800000> : vector<2xf32>
    %23 = vector.multi_reduction <maximumf>, %22, %cst_13 [1] : vector<2x8xf32> to vector<2xf32>
    %24 = vector.shape_cast %23 : vector<2xf32> to vector<2x1xf32>
    %25 = vector.broadcast %24 : vector<2x1xf32> to vector<2x8xf32>
    %26 = arith.subf %22, %25 : vector<2x8xf32>
    %27 = math.exp %26 : vector<2x8xf32>
    %cst_14 = arith.constant dense<0.000000e+00> : vector<2xf32>
    %28 = vector.multi_reduction <add>, %27, %cst_14 [1] : vector<2x8xf32> to vector<2xf32>
    %29 = vector.shape_cast %28 : vector<2xf32> to vector<2x1xf32>
    %30 = tpu.reciprocal %29 {approx = true} : vector<2x1xf32> -> vector<2x1xf32>
    %31 = vector.broadcast %30 : vector<2x1xf32> to vector<2x8xf32>
    %32 = arith.mulf %27, %31 : vector<2x8xf32>
    %33 = vector.shape_cast %32 : vector<2x8xf32> to vector<2x8x1xf32>
    %34 = vector.broadcast %33 : vector<2x8x1xf32> to vector<2x8x32xf32>
    %35 = arith.mulf %34, %9 : vector<2x8x32xf32>
    %cst_15 = arith.constant dense<0.000000e+00> : vector<2x32xf32>
    %36 = vector.multi_reduction <add>, %35, %cst_15 [1] : vector<2x8x32xf32> to vector<2x32xf32>
    %c0_16 = arith.constant 0 : index
    %c0_17 = arith.constant 0 : index
    %37 = vector.load %arg6[%c0_16, %c0_17] : memref<2x32xf32, #tpu.memory_space<vmem>>, vector<2x32xf32>
    tpu.vector_store %arg6[%c0_16, %c0_17], %36 {strides = array<i32>} : memref<2x32xf32, #tpu.memory_space<vmem>>, vector<2x32xf32>,
    return
  }
  func.func @transform_0(%arg0: i32) -> (i32, i32, i32) {
    %c0_i32 = arith.constant 0 : i32
    %c0_i32_0 = arith.constant 0 : i32
    %c0_i32_1 = arith.constant 0 : i32
    return %arg0, %c0_i32, %c0_i32_0 : i32, i32, i32
  }
  func.func @transform_1(%arg0: i32) -> (i32, i32) {
    %c0_i32 = arith.constant 0 : i32
    %c0_i32_0 = arith.constant 0 : i32
    %c0_i32_1 = arith.constant 0 : i32
    return %c0_i32, %c0_i32_0 : i32, i32
  }
  func.func @transform_2(%arg0: i32) -> (i32, i32) {
    %c0_i32 = arith.constant 0 : i32
    %c0_i32_0 = arith.constant 0 : i32
    %c0_i32_1 = arith.constant 0 : i32
    return %c0_i32, %c0_i32_0 : i32, i32
  }
  func.func @transform_3(%arg0: i32) -> (i32, i32) {
    %c0_i32 = arith.constant 0 : i32
    %c0_i32_0 = arith.constant 0 : i32
    %c0_i32_1 = arith.constant 0 : i32
    return %c0_i32, %c0_i32_0 : i32, i32
  }
  func.func @transform_4(%arg0: i32) -> (i32, i32) {
    %c0_i32 = arith.constant 0 : i32
    %c0_i32_0 = arith.constant 0 : i32
    %c0_i32_1 = arith.constant 0 : i32
    return %c0_i32, %c0_i32_0 : i32, i32
  }
  func.func @transform_5(%arg0: i32) -> (i32, i32) {
    %c0_i32 = arith.constant 0 : i32
    %c0_i32_0 = arith.constant 0 : i32
    return %arg0, %c0_i32 : i32, i32
  }
}

</mosaic_0001>

<bundles_post_ra>
// kernel: tpu_custom_call.1
= control target key start
LH: loop header
LB: loop body
LE: loop exit
PB: predicated region body
PF: predicated region fallthrough
CT: control target
= control target key end

     0   :  { %10 = vsyncpa [#allocation3], 0  ;;  %s702_s0 = inlined_call_operand.hbm [shape: f32[2,8,32], index: 0, kind: input, shape index: {}]   ;;  %s703_s1 = inlined_call_operand.hbm [shape: f32[32,32], index: 1, kind: input, shape index: {}]   ;;  %s704_s2 = inlined_call_operand.vmem [shape: f32[1,32], index: 2, kind: input, shape index: {}]   ;;  %s705_s3 = inlined_call_operand.hbm [shape: f32[32,64], index: 3, kind: input, shape index: {}]   ;;  %s706_s4 = inlined_call_operand.vmem [shape: f32[1,64], index: 4, kind: input, shape index: {}]   ;;  %s707_s5 = inlined_call_operand.hbm [shape: f32[2,32], index: 5, kind: output, shape index: {}]  }
   0x1   :  { %11 = vsyncpa [#allocation6], 0 }
   0x2   :  { %12 = vsyncpa [#allocation4], 0  ;;  %s573_s18 = smov [#allocation5]   ;;  %s574_s20 = smov [#allocation2]  }
   0x3   :  { %s30_s19 = sshll.u32 %s573_s18, 4  ;;  %s18_s21 = sshll.u32 %s574_s20, 4  ;;  %s31_s19 = int_to_ptr.vmem [resolvable:$true] %s30_s19  ;;  %s615_s21 = int_to_ptr.vmem [resolvable:$true] %s18_s21 }
   0x4   :  { %s479_s24 = scalar_lea.hbm %s703_s1, 512 }
   0x5   :  { %p480_p0 = scmp.ne.s32.totalorder %s703_s1, %s479_s24  ;;  %p483_p1 = scmp.lt.u32.totalorder %s479_s24, %s703_s1 }
   0x7   :  { %p485_p2 = pnand %p483_p1, %p480_p0 }
   0x9   :  { %488 = shalt.err (!%p485_p2)
}
   0xa   :  { %s489_s29 = scalar_lea.vmem %s31_s19, 512  ;;  %p494_p4 = scmp.lt.s32.totalorder %s31_s19, %s31_s19 }
   0xb   :  { %p490_p3 = scmp.ne.s32.totalorder %s31_s19, %s489_s29  ;;  %p495_p5 = scmp.lt.s32.totalorder %s489_s29, %s489_s29 }
   0xd   :  { %p496_p6 = por %p495_p5, %p494_p4 }
   0xf   :  { %p497_p7 = pnand %p496_p6, %p490_p3 }
  0x11   :  { %500 = shalt.err (!%p497_p7)
}
  0x12   :  { %s575_s30 = smov 128   ;;  %s576_s6 = smov 8  }
  0x13   :  { %36 = dma.hbm_to_vmem [thread:$0]  %s703_s1, 512, %s31_s19, [#allocation6], %s575_s30, %s575_s30, %s576_s6  }
  0x14   :  { %s501_s11 = scalar_lea.hbm %s702_s0, 256 }
  0x15   :  { %p502_p8 = scmp.ne.s32.totalorder %s702_s0, %s501_s11  ;;  %p505_p9 = scmp.lt.u32.totalorder %s501_s11, %s702_s0 }
  0x17   :  { %p507_p10 = pnand %p505_p9, %p502_p8 }
  0x19   :  { %510 = shalt.err (!%p507_p10)
}
  0x1a   :  { %s511_s16 = scalar_lea.vmem %s615_s21, 256  ;;  %p516_p12 = scmp.lt.s32.totalorder %s615_s21, %s615_s21 }
  0x1b   :  { %p512_p11 = scmp.ne.s32.totalorder %s615_s21, %s511_s16  ;;  %p517_p13 = scmp.lt.s32.totalorder %s511_s16, %s511_s16 }
  0x1d   :  { %p518_p0 = por %p517_p13, %p516_p12 }
  0x1f   :  { %p519_p1 = pnand %p518_p0, %p512_p11 }
  0x21   :  { %522 = shalt.err (!%p519_p1)
}
  0x22   :  { %24 = dma.hbm_to_vmem [thread:$0]  %s702_s0, 256, %s615_s21, [#allocation3], %s575_s30, %s575_s30, %s576_s6  }
  0x23   :  { %s577_s18 = smov [#allocation7]   ;;  %s523_s23 = scalar_lea.hbm %s705_s3, 512 }
  0x24   :  { %s44_s19 = sshll.u32 %s577_s18, 4  ;;  %p524_p2 = scmp.ne.s32.totalorder %s705_s3, %s523_s23  ;;  %s45_s19 = int_to_ptr.vmem [resolvable:$true] %s44_s19 }
  0x25   :  { %p527_p3 = scmp.lt.u32.totalorder %s523_s23, %s705_s3 }
  0x27   :  { %p529_p4 = pnand %p527_p3, %p524_p2 }
  0x29   :  { %532 = shalt.err (!%p529_p4)
}
  0x2a   :  { %s533_s28 = scalar_lea.vmem %s45_s19, 512  ;;  %p538_p6 = scmp.lt.s32.totalorder %s45_s19, %s45_s19 }
  0x2b   :  { %p534_p5 = scmp.ne.s32.totalorder %s45_s19, %s533_s28  ;;  %p539_p7 = scmp.lt.s32.totalorder %s533_s28, %s533_s28 }
  0x2d   :  { %p540_p8 = por %p539_p7, %p538_p6 }
  0x2f   :  { %p541_p9 = pnand %p540_p8, %p534_p5 }
  0x31   :  { %544 = shalt.err (!%p541_p9)
}
  0x32   :  { %50 = dma.hbm_to_vmem [thread:$0]  %s705_s3, 512, %s45_s19, [#allocation6], %s575_s30, %s575_s30, %s576_s6  }
  0x33   :  { %567 = dma.done.wait [#allocation3], 256  }
  0x34   :  { %568 = vsyncadd [#allocation3], 4294967040 }
  0x35   :  { %569 = dma.done.wait [#allocation6], 1024  }
  0x36   :  { %570 = vsyncadd [#allocation6], 4294966272  ;;  %v578_v0 = vmov 0.0|0.0   ;;  %vm579_vm0 = vmmov 0   ;;  %v580_v1 = vmov 0.0   ;;  %v157_v2 = vld [vmem:[#allocation5] sm:$0xff]  ;;  %v247_v20 = vlaneseq }
  0x37   :  { %453 = vmatprep.subr.bf16.mxu1 %v578_v0  ;;  %442 = vmatprep.mubr.msk.f32.mxu1 %vm579_vm0, %v580_v1  ;;  %v158_v3 = vld [vmem:[#allocation5 + $0x8] sm:$0xff]  ;;  %v64_v4 = vld [vmem:[#allocation7] sm:$0xff]  ;;  %v159_v7 = vld [vmem:[#allocation5 + $0x10] sm:$0xff]  ;;  %vm75_vm1 = vcmask 261120   ;;  %vm169_vm2 = vcmask 1041409   ;;  %vm300_vm3 = vcmask 58368  }
  0x38   :  { %v454_v5 = vpack.c.bf16 %v158_v3, %v157_v2  ;;  %v65_v6 = vld [vmem:[#allocation7 + $0x8] sm:$0xff]  ;;  %v160_v8 = vld [vmem:[#allocation5 + $0x18] sm:$0xff]  ;;  %v66_v10 = vld [vmem:[#allocation7 + $0x10] sm:$0xff]  ;;  %v581_v18 = vmov 1966171168   ;;  %v671_v22 = vshrl.u32 %v247_v20, 7 }
  0x39   :  { %v445_v9 = vpack.c.bf16 %v65_v6, %v64_v4  ;;  %v67_v11 = vld [vmem:[#allocation7 + $0x18] sm:$0xff]  ;;  %v62_v12 = vld [vmem:[#allocation2] sm:$0xff]  ;;  %v457_v13 = vpack.c.bf16 %v160_v8, %v159_v7  ;;  %v245_v19 = vunpack.c.l.s4 %v581_v18  ;;  %v289_v44 = vand.u32 127, %v247_v20 }
  0x3a   :  { %455 = vmatpush3.bf16.msra.mxu1 %v454_v5  ;;  %v449_v14 = vpack.c.bf16 %v67_v11, %v66_v10  ;;  %v63_v15 = vld [vmem:[#allocation2 + $0x8] sm:$0xff]  ;;  %431 = vmatprep.mubr.msk.f32.mxu0 %vm75_vm1, %v62_v12  ;;  %v410_v23 = vld [vmem:[%s704_s2] ss:$0 sm:$0xff]  ;;  %v268_v32 = vsub.s32 0, %v671_v22  ;;  %v582_v54 = vmov 0   ;;  %v311_v55 = vsub.s32 1, %v671_v22 }
  0x3b   :  { %446 = vmatprep.subr.bf16.mxu0 %v445_v9  ;;  %456 = vmatprep.subr.bf16.mxu1 %v578_v0  ;;  %v168_v16 = vrot.slane %v63_v15, 7  ;;  %v246_v21 = vunpack.c.0.s8 %v245_v19  ;;  %v407_v29 = vld [vmem:[%s706_s4] ss:$0 sm:$0xff]  ;;  %v292_v46 = vsub.s32 %v289_v44, %v671_v22  ;;  %vm368_vm4 = vcmask 523520   ;;  %s583_s2 = smov 96   ;;  %s584_s4 = smov [#allocation8]  }
  0x3c   :  { %448 = vmatpush3.bf16.msra.mxu0 %v445_v9  ;;  %472 = vset.pattern.permute.xlu0 %v582_v54  ;;  %s397_s7 = sshll.u32 %s584_s4, 4  ;;  %vm389_vm5 = vcmask 254976   ;;  %s398_s7 = int_to_ptr.vmem [resolvable:$true] %s397_s7 }
  0x3d   :  { %450 = vmatprep.subr.bf16.mxu0 %v449_v14  ;;  %v170_v17 = vsel %vm169_vm2, %v168_v16, %v62_v12  ;;  %v249_v24 = vsub.s32 %v246_v21, %v671_v22  ;;  %471 = vset.pattern.permute.xlu1 %v582_v54  ;;  %s545_s8 = scalar_lea.vmem %s398_s7, 32  ;;  %p550_p11 = scmp.lt.s32.totalorder %s398_s7, %s398_s7 }
  0x3e   :  { %458 = vmatpush3.bf16.msra.mxu1 %v457_v13  ;;  %p546_p10 = scmp.ne.s32.totalorder %s398_s7, %s545_s8  ;;  %p551_p12 = scmp.lt.s32.totalorder %s545_s8, %s545_s8 }
  0x40   :  { %452 = vmatpush3.bf16.msra.mxu0 %v449_v14  ;;  %p552_p13 = por %p551_p12, %p550_p11 }
  0x41   :  { %443 = vmatmul.mubr.msk.f32.vlgmr.msra.gmra.mrb[0].mxu1 %vm75_vm1, %v170_v17 }
  0x42   :  { %p553_p0 = pnand %p552_p13, %p546_p10 }
  0x43   :  { %432 = vmatmul.mubr.msk.f32.vlgmr.msra.gmra.mrb[0].mxu0 %vm75_vm1, %v63_v15 }
 0x114   :  { %v239_v25 = vpop.f32.mrb[0].mxu1 }
 0x115   :  { %v240_v26 = vadd.f32 %v410_v23, %v239_v25  ;;  %v444_v27 = vpop.f32.mrb[1].mxu1 }
 0x116   :  { %v433_v28 = vpop.f32.mrb[0].mxu0 }
 0x117   :  { %v250_v30 = vrot.slane %v240_v26, %v249_v24  ;;  %v148_v31 = vpop.f32.mrb[1].mxu0  ;;  %v154_v38 = vadd.f32 %v433_v28, %v407_v29 }
 0x118   :  { %v149_v35 = vadd.f32 %v407_v29, %v148_v31 }
 0x119   :  { %v251_v33 = vcombine.high %v250_v30, %v250_v30  ;;  %v258_v34 = vrot.slane %v250_v30, %v249_v24 }
 0x11b   :  { %v269_v36 = vrot.slane %v258_v34, %v268_v32  ;;  %v265_v37 = vrot.slane %v251_v33, %v249_v24 }
 0x11d   :  { %v276_v39 = vmul.f32 %v269_v36, %v149_v35  ;;  %v273_v40 = vrot.slane %v265_v37, %v268_v32 }
 0x11f   :  { %v278_v41 = vsel %vm75_vm1, %v276_v39, 0.0  ;;  %v277_v42 = vmul.f32 %v273_v40, %v154_v38 }
 0x120   :  { %279 = vadd.xlane.f32.xlu0 %v278_v41 }
 0x121   :  { %v281_v43 = vsel %vm75_vm1, %v277_v42, 0.0 }
 0x124   :  { %282 = vadd.xlane.f32.xlu0 %v281_v43 }
 0x1ad   :  { %v280_v45 = vpop.xlane.xlu0 %279 }
 0x1ae   :  { %v284_v47 = vmul.f32 0.17677669, %v280_v45 }
 0x1b0   :  { %v293_v50 = vrot.slane %v284_v47, %v292_v46 }
 0x1b1   :  { %v283_v48 = vpop.xlane.xlu0 %282 }
 0x1b2   :  { %v285_v49 = vmul.f32 0.17677669, %v283_v48 }
 0x1b4   :  { %v297_v51 = vrot.slane %v285_v49, %v292_v46 }
 0x1b6   :  { %v298_v52 = vsel %vm169_vm2, %v297_v51, %v293_v50 }
 0x1b7   :  { %v301_v53 = vsel %vm300_vm3, %v298_v52, -inf }
 0x1b8   :  { %302 = vmax.xlane.f32.xlu1 %v301_v53 }
 0x245   :  { %v303_v56 = vpop.xlane.xlu1 %302 }
 0x246   :  { %v308_v57 = vrot.slane %v303_v56, %v268_v32  ;;  %v312_v58 = vrot.slane %v303_v56, %v311_v55 }
 0x248   :  { %v315_v59 = vsub.f32 %v284_v47, %v308_v57  ;;  %v316_v60 = vsub.f32 %v285_v49, %v312_v58 }
 0x24a   :  { %v317_v61 = vmul.f32 1.442695, %v315_v59  ;;  %v319_v62 = vmul.f32 1.442695, %v316_v60 }
 0x24c   :  { %473 = vpow2.f32 %v317_v61 }
 0x24d   :  { %475 = vpow2.f32 %v319_v62 }
 0x256   :  { %v474_v63 = vpop.eup %473 }
 0x257   :  { %v476_v0 = vpop.eup %475  ;;  %324 = vperm.xlu1 %471, %v474_v63  }
 0x258   :  { %327 = vperm.xlu0 %472, %v476_v0  }
 0x2d6   :  { %v325_v1 = vpop.permute.xlu1 %324 }
 0x2d7   :  { %v328_v2 = vpop.permute.xlu0 %327  ;;  %v332_v3 = vrot.slane %v325_v1, %v292_v46 }
 0x2d8   :  { %v336_v4 = vrot.slane %v328_v2, %v292_v46 }
 0x2da   :  { %v337_v5 = vsel %vm169_vm2, %v336_v4, %v332_v3 }
 0x2db   :  { %v339_v6 = vsel %vm300_vm3, %v337_v5, 0.0 }
 0x2dc   :  { %340 = vadd.xlane.f32.xlu1 %v339_v6 }
 0x369   :  { %v341_v7 = vpop.xlane.xlu1 %340 }
 0x36a   :  { %477 = vrcp.f32 %v341_v7 }
 0x374   :  { %v478_v8 = vpop.eup %477 }
 0x375   :  { %v347_v9 = vrot.slane %v478_v8, %v268_v32  ;;  %v351_v11 = vrot.slane %v478_v8, %v311_v55 }
 0x377   :  { %v354_v10 = vmul.f32 %v474_v63, %v347_v9  ;;  %v355_v12 = vmul.f32 %v476_v0, %v351_v11 }
 0x379   :  { %358 = vperm.xlu0 %472, %v354_v10  }
 0x37d   :  { %363 = vperm.xlu0 %472, %v355_v12  }
 0x3f8   :  { %v359_v13 = vpop.permute.xlu0 %358 }
 0x3f9   :  { %v366_v14 = vmul.f32 %v359_v13, %v149_v35 }
 0x3fb   :  { %v369_v15 = vsel %vm368_vm4, %v366_v14, 0.0 }
 0x3fc   :  { %v370_v16 = vrot.slane %v369_v15, 4  ;;  %v364_v17 = vpop.permute.xlu0 %363 }
 0x3fd   :  { %v367_v18 = vmul.f32 %v364_v17, %v154_v38 }
 0x3fe   :  { %v371_v19 = vadd.f32 %v370_v16, %v369_v15 }
 0x3ff   :  { %v376_v20 = vsel %vm368_vm4, %v367_v18, 0.0 }
 0x400   :  { %v372_v21 = vrot.slane %v371_v19, 2  ;;  %v377_v22 = vrot.slane %v376_v20, 4 }
 0x402   :  { %v373_v23 = vadd.f32 %v372_v21, %v371_v19  ;;  %v378_v24 = vadd.f32 %v377_v22, %v376_v20 }
 0x404   :  { %v379_v25 = vrot.slane %v378_v24, 2  ;;  %v374_v26 = vrot.slane %v373_v23, 1 }
 0x406   :  { %v380_v27 = vadd.f32 %v379_v25, %v378_v24  ;;  %v375_v29 = vadd.f32 %v374_v26, %v373_v23 }
 0x408   :  { %v381_v28 = vrot.slane %v380_v27, 1 }
 0x40a   :  { %v382_v30 = vadd.f32 %v381_v28, %v380_v27 }
 0x40c   :  { %v385_v31 = vsel %vm169_vm2, %v382_v30, %v375_v29 }
 0x40d   :  { %386 = vrot.lane.b32.xlu1 %v385_v31, %s583_s2 }
 0x47f   :  { %v387_v32 = vpop.permute.xlu1 %386 }
 0x480   :  { %390 = vst.msk [vmem:[#allocation8] sm:$0x3] %vm389_vm5, %v387_v32 }
 0x481   :  { %556 = shalt.err (!%p553_p0)
}
 0x482   :  { %s557_s11 = scalar_lea.hbm %s707_s5, 32 }
 0x483   :  { %p558_p1 = scmp.ne.s32.totalorder %s707_s5, %s557_s11  ;;  %p561_p2 = scmp.lt.u32.totalorder %s557_s11, %s707_s5 }
 0x485   :  { %p563_p3 = pnand %p561_p2, %p558_p1 }
 0x487   :  { %566 = shalt.err (!%p563_p3)
}
 0x488   :  { %400 = dma.vmem_to_hbm [thread:$0]  %s398_s7, 32, %s707_s5, [#allocation4]  }
 0x489   :  { %571 = dma.done.wait [#allocation4], 32  }
 0x48a   :  { %572 = vsyncadd [#allocation4], 4294967264 }
 0x48b   :  { %404 = vsyncpa [#allocation3], 1 }
 0x48c   :  { %405 = vsyncpa [#allocation6], 1 }
 0x48d   :  { %406 = vsyncpa [#allocation4], 1 }

</bundles_post_ra>
